<compile_context>
chip_gen: v7x
topology: tpu7x:2x2x1
jax: 0.10.0
libtpu: 0.0.40
codegen_flags: <defaults>
</compile_context>

<pallas_src>
import functools

import jax
import jax.numpy as jnp
from jax.experimental import pallas as pl
from jax.experimental.pallas import tpu as pltpu

EPS = 1e-5  # torch.nn.LayerNorm default


def _round_up(x, m):
    return ((x + m - 1) // m) * m


def _layernorm(x, gamma, beta):
    # LayerNorm over the last axis, biased variance (PyTorch semantics), f32.
    mean = jnp.mean(x, axis=-1, keepdims=True)
    xc = x - mean
    var = jnp.mean(xc * xc, axis=-1, keepdims=True)
    inv = jax.lax.rsqrt(var + EPS)          # EUP rsqrt (free slot vs VALU)
    return xc * inv * gamma + beta


def critic_kernel(state_ref, action_ref, w1_ref, w2_ref, wa_ref, vecs_ref,
                  out_ref, *, fc1, fc2):
    state = state_ref[...]          # (TB, D_in)   compute dtype
    action = action_ref[...]        # (TB, N_act)  compute dtype
    vecs = vecs_ref[...]            # (9, fmax)    f32 packed small vectors

    b1, g1, be1 = vecs[0:1, :fc1], vecs[1:2, :fc1], vecs[2:3, :fc1]
    b2, g2, be2 = vecs[3:4, :fc2], vecs[4:5, :fc2], vecs[5:6, :fc2]
    ba = vecs[6:7, :fc2]
    wq_row = vecs[7:8, :fc2]        # q head weight as a (1, fc2) row
    bq = vecs[8:9, 0:1]             # q head bias, (1, 1)

    # fc1 -> LayerNorm -> relu   (MXU matmul, f32 accumulation)
    sv = jnp.dot(state, w1_ref[...], preferred_element_type=jnp.float32) + b1
    sv = _layernorm(sv, g1, be1)
    sv = jnp.maximum(sv, 0.0)

    # fc2 -> LayerNorm -> relu
    sv = jnp.dot(sv.astype(w2_ref.dtype), w2_ref[...],
                 preferred_element_type=jnp.float32) + b2
    sv = _layernorm(sv, g2, be2)
    sv = jnp.maximum(sv, 0.0)

    # action branch (cannot be fused with fc2: LayerNorm sits between them)
    av = jnp.dot(action, wa_ref[...], preferred_element_type=jnp.float32) + ba

    # merge + relu
    sa = jnp.maximum(sv + av, 0.0)

    # Width-1 q head as VPU multiply + lane reduce.
    q = jnp.sum(sa * wq_row, axis=-1, keepdims=True) + bq   # (TB, 1) f32

    # Lane-dense store: broadcast q across the 128 output lanes; wrapper
    # slices column 0.  Avoids masked vst.msk partial stores.
    out_ref[...] = jnp.broadcast_to(q, out_ref.shape).astype(out_ref.dtype)


def critic_forward(state, action, params, *, tb=512,
                   compute_dtype=jnp.bfloat16):
    """Run the Critic forward pass with a batch-tiled Pallas kernel."""
    B, d_in = state.shape
    n_act = action.shape[1]
    fc1 = params["w1"].shape[1]
    fc2 = params["w2"].shape[1]
    fmax = max(fc1, fc2)

    # Batch tile: multiple of 8 (sublane), capped at `tb`; pad batch to fit.
    TB = min(tb, _round_up(B, 8))
    Bp = _round_up(B, TB)
    if Bp != B:
        state = jnp.pad(state, ((0, Bp - B), (0, 0)))
        action = jnp.pad(action, ((0, Bp - B), (0, 0)))

    # Matmul operands in compute dtype (bf16 by default -> native MXU rate,
    # half the weight/activation HBM+VMEM traffic); accumulation stays f32.
    state = state.astype(compute_dtype)
    action = action.astype(compute_dtype)
    w1 = params["w1"].astype(compute_dtype)
    w2 = params["w2"].astype(compute_dtype)
    wa = params["wa"].astype(compute_dtype)

    # Pack the 8 tiny (1, fc) vectors + q-head row + q bias into ONE f32
    # array so the kernel issues a single small DMA instead of nine.
    vecs = jnp.zeros((9, fmax), jnp.float32)
    vecs = vecs.at[0, :fc1].set(params["b1"].reshape(-1))
    vecs = vecs.at[1, :fc1].set(params["g1"].reshape(-1))
    vecs = vecs.at[2, :fc1].set(params["be1"].reshape(-1))
    vecs = vecs.at[3, :fc2].set(params["b2"].reshape(-1))
    vecs = vecs.at[4, :fc2].set(params["g2"].reshape(-1))
    vecs = vecs.at[5, :fc2].set(params["be2"].reshape(-1))
    vecs = vecs.at[6, :fc2].set(params["ba"].reshape(-1))
    vecs = vecs.at[7, :fc2].set(params["wq"].reshape(-1))
    vecs = vecs.at[8, 0].set(params["bq"].reshape(-1)[0])

    grid = (Bp // TB,)
    batch_map = lambda i: (i, 0)
    const_map = lambda i: (0, 0)

    itemsz = jnp.dtype(compute_dtype).itemsize
    flops = 2 * Bp * (d_in * fc1 + fc1 * fc2 + n_act * fc2 + fc2)
    bytes_accessed = (
        (state.size + action.size + w1.size + w2.size + wa.size) * itemsz
        + vecs.size * 4 + Bp * 128 * 4)

    out = pl.pallas_call(
        functools.partial(critic_kernel, fc1=fc1, fc2=fc2),
        out_shape=jax.ShapeDtypeStruct((Bp, 128), jnp.float32),
        grid=grid,
        in_specs=[
            pl.BlockSpec((TB, d_in), batch_map),    # state tile
            pl.BlockSpec((TB, n_act), batch_map),   # action tile
            pl.BlockSpec((d_in, fc1), const_map),   # w1 (resident)
            pl.BlockSpec((fc1, fc2), const_map),    # w2 (resident)
            pl.BlockSpec((n_act, fc2), const_map),  # wa (resident)
            pl.BlockSpec((9, fmax), const_map),     # packed small vectors
        ],
        out_specs=pl.BlockSpec((TB, 128), batch_map),
        compiler_params=pltpu.CompilerParams(
            dimension_semantics=("parallel",),       # shard batch over TCs
            vmem_limit_bytes=32 * 1024 * 1024,       # explicit, v7x-safe
        ),
        cost_estimate=pl.CostEstimate(
            flops=int(flops),
            transcendentals=int(2 * Bp),
            bytes_accessed=int(bytes_accessed)),
    )(state, action, w1, w2, wa, vecs)

    return out[:B, :1]


def init_params(key, input_dims, fc1, fc2, n_actions):
    """Deterministic init mirroring the intended PyTorch init ranges."""
    ks = jax.random.split(key, 8)
    f1 = 1.0 / jnp.sqrt(jnp.float32(input_dims))
    f2 = 1.0 / jnp.sqrt(jnp.float32(fc1))
    f3 = 0.003
    f4 = 1.0 / jnp.sqrt(jnp.float32(n_actions))

    def u(k, shape, lim):
        return jax.random.uniform(k, shape, jnp.float32, -lim, lim)

    return {
        "w1": u(ks[0], (input_dims, fc1), f1),
        "b1": u(ks[1], (1, fc1), f1),
        "g1": jnp.ones((1, fc1), jnp.float32),
        "be1": jnp.zeros((1, fc1), jnp.float32),
        "w2": u(ks[2], (fc1, fc2), f2),
        "b2": u(ks[3], (1, fc2), f2),
        "g2": jnp.ones((1, fc2), jnp.float32),
        "be2": jnp.zeros((1, fc2), jnp.float32),
        "wa": u(ks[4], (n_actions, fc2), f4),
        "ba": u(ks[5], (1, fc2), f4),
        "wq": u(ks[6], (fc2, 1), f3),
        "bq": u(ks[7], (1, 1), f3),
    }


def critic_ref(state, action, p):
    """Pure-JAX f32 reference for correctness checking."""
    def ln(x, g, b):
        m = jnp.mean(x, -1, keepdims=True)
        v = jnp.mean((x - m) ** 2, -1, keepdims=True)
        return (x - m) / jnp.sqrt(v + EPS) * g + b

    sv = ln(state @ p["w1"] + p["b1"], p["g1"], p["be1"])
    sv = jax.nn.relu(sv)
    sv = ln(sv @ p["w2"] + p["b2"], p["g2"], p["be2"])
    sv = jax.nn.relu(sv)
    av = action @ p["wa"] + p["ba"]
    sa = jax.nn.relu(sv + av)
    return sa @ p["wq"] + p["bq"]


if __name__ == "__main__":
    # Small shapes consistent with the module: Critic(input_dims, fc1, fc2, n_actions)
    B, INPUT_DIMS, FC1, FC2, N_ACTIONS = 2, 16, 32, 32, 8

    key = jax.random.PRNGKey(0)
    k_state, k_action, k_params = jax.random.split(key, 3)

    state = jax.random.normal(k_state, (B, INPUT_DIMS), jnp.float32)
    action = jax.random.normal(k_action, (B, N_ACTIONS), jnp.float32)
    params = init_params(k_params, INPUT_DIMS, FC1, FC2, N_ACTIONS)

    q_ref = critic_ref(state, action, params)

    # f32 compute path: tight check against the reference.
    q32 = jax.block_until_ready(
        critic_forward(state, action, params, compute_dtype=jnp.float32))
    assert q32.shape == (B, 1)
    assert jnp.allclose(q32, q_ref, atol=1e-4, rtol=1e-4), (q32, q_ref)

    # Default bf16-matmul / f32-accumulate path: loosened tolerance.
    q = jax.block_until_ready(critic_forward(state, action, params))
    assert q.shape == (B, 1)
    assert jnp.allclose(q, q_ref, atol=5e-2, rtol=5e-2), (q, q_ref)

    print("KERNEL_OK")
</pallas_src>

<mosaic_0001>
module attributes {stable_mosaic.version = 11 : i64} {
  func.func @critic_kernel(%arg0: i32, %arg1: memref<8x16xf32, #tpu.memory_space<vmem>>, %arg2: memref<8x8xf32, #tpu.memory_space<vmem>>, %arg3: memref<16x32xf32, #tpu.memory_space<vmem>>, %arg4: memref<32x32xf32, #tpu.memory_space<vmem>>, %arg5: memref<8x32xf32, #tpu.memory_space<vmem>>, %arg6: memref<9x32xf32, #tpu.memory_space<vmem>>, %arg7: memref<8x128xf32, #tpu.memory_space<vmem>>) attributes {dimension_semantics = [#tpu.dimension_semantics<parallel>], iteration_bounds = array<i64: 1>, scalar_prefetch = 0 : i64, scratch_operands = 0 : i64, tpu.core_type = #tpu.core_type<tc>, window_params = [{transform_indices = @transform_0, window_bounds = array<i64: 8, 16>}, {transform_indices = @transform_1, window_bounds = array<i64: 8, 8>}, {pipeline_mode = #tpu.pipeline_mode<synchronous>, transform_indices = @transform_2, window_bounds = array<i64: 16, 32>}, {pipeline_mode = #tpu.pipeline_mode<synchronous>, transform_indices = @transform_3, window_bounds = array<i64: 32, 32>}, {pipeline_mode = #tpu.pipeline_mode<synchronous>, transform_indices = @transform_4, window_bounds = array<i64: 8, 32>}, {pipeline_mode = #tpu.pipeline_mode<synchronous>, transform_indices = @transform_5, window_bounds = array<i64: 9, 32>}, {transform_indices = @transform_6, window_bounds = array<i64: 8, 128>}]} {
    %c0 = arith.constant 0 : index
    %c0_0 = arith.constant 0 : index
    %0 = vector.load %arg1[%c0, %c0_0] : memref<8x16xf32, #tpu.memory_space<vmem>>, vector<8x16xf32>
    %c0_1 = arith.constant 0 : index
    %c0_2 = arith.constant 0 : index
    %1 = vector.load %arg2[%c0_1, %c0_2] : memref<8x8xf32, #tpu.memory_space<vmem>>, vector<8x8xf32>
    %c0_3 = arith.constant 0 : index
    %c0_4 = arith.constant 0 : index
    %2 = vector.load %arg6[%c0_3, %c0_4] : memref<9x32xf32, #tpu.memory_space<vmem>>, vector<9x32xf32>
    %3 = vector.extract_strided_slice %2 {offsets = [0, 0], sizes = [1, 32], strides = [1, 1]} : vector<9x32xf32> to vector<1x32xf32>
    %4 = vector.extract_strided_slice %2 {offsets = [1, 0], sizes = [1, 32], strides = [1, 1]} : vector<9x32xf32> to vector<1x32xf32>
    %5 = vector.extract_strided_slice %2 {offsets = [2, 0], sizes = [1, 32], strides = [1, 1]} : vector<9x32xf32> to vector<1x32xf32>
    %6 = vector.extract_strided_slice %2 {offsets = [3, 0], sizes = [1, 32], strides = [1, 1]} : vector<9x32xf32> to vector<1x32xf32>
    %7 = vector.extract_strided_slice %2 {offsets = [4, 0], sizes = [1, 32], strides = [1, 1]} : vector<9x32xf32> to vector<1x32xf32>
    %8 = vector.extract_strided_slice %2 {offsets = [5, 0], sizes = [1, 32], strides = [1, 1]} : vector<9x32xf32> to vector<1x32xf32>
    %9 = vector.extract_strided_slice %2 {offsets = [6, 0], sizes = [1, 32], strides = [1, 1]} : vector<9x32xf32> to vector<1x32xf32>
    %10 = vector.extract_strided_slice %2 {offsets = [7, 0], sizes = [1, 32], strides = [1, 1]} : vector<9x32xf32> to vector<1x32xf32>
    %11 = vector.extract_strided_slice %2 {offsets = [8, 0], sizes = [1, 1], strides = [1, 1]} : vector<9x32xf32> to vector<1x1xf32>
    %c0_5 = arith.constant 0 : index
    %c0_6 = arith.constant 0 : index
    %12 = vector.load %arg3[%c0_5, %c0_6] : memref<16x32xf32, #tpu.memory_space<vmem>>, vector<16x32xf32>
    %cst = arith.constant dense<0.000000e+00> : vector<8x32xf32>
    %13 = tpu.matmul %0, %12, %cst {dimension_numbers = #tpu.dot_dimension_numbers<[1], [0], [0], [1], [0, 0, 1, 1], [], []>} : vector<8x16xf32>, vector<16x32xf32>, vector<8x32xf32> -> vector<8x32xf32>
    %14 = vector.broadcast %3 : vector<1x32xf32> to vector<8x32xf32>
    %15 = arith.addf %13, %14 : vector<8x32xf32>
    %cst_7 = arith.constant dense<0.000000e+00> : vector<8xf32>
    %16 = vector.multi_reduction <add>, %15, %cst_7 [1] : vector<8x32xf32> to vector<8xf32>
    %17 = vector.shape_cast %16 : vector<8xf32> to vector<8x1xf32>
    %cst_8 = arith.constant 3.200000e+01 : f32
    %18 = vector.broadcast %cst_8 : f32 to vector<8x1xf32>
    %19 = arith.divf %17, %18 : vector<8x1xf32>
    %20 = vector.broadcast %19 : vector<8x1xf32> to vector<8x32xf32>
    %21 = arith.subf %15, %20 : vector<8x32xf32>
    %22 = arith.mulf %21, %21 : vector<8x32xf32>
    %cst_9 = arith.constant dense<0.000000e+00> : vector<8xf32>
    %23 = vector.multi_reduction <add>, %22, %cst_9 [1] : vector<8x32xf32> to vector<8xf32>
    %24 = vector.shape_cast %23 : vector<8xf32> to vector<8x1xf32>
    %cst_10 = arith.constant 3.200000e+01 : f32
    %25 = vector.broadcast %cst_10 : f32 to vector<8x1xf32>
    %26 = arith.divf %24, %25 : vector<8x1xf32>
    %cst_11 = arith.constant 9.99999974E-6 : f32
    %27 = vector.broadcast %cst_11 : f32 to vector<8x1xf32>
    %28 = arith.addf %26, %27 : vector<8x1xf32>
    %29 = math.rsqrt %28 : vector<8x1xf32>
    %30 = vector.broadcast %29 : vector<8x1xf32> to vector<8x32xf32>
    %31 = arith.mulf %21, %30 : vector<8x32xf32>
    %32 = vector.broadcast %4 : vector<1x32xf32> to vector<8x32xf32>
    %33 = arith.mulf %31, %32 : vector<8x32xf32>
    %34 = vector.broadcast %5 : vector<1x32xf32> to vector<8x32xf32>
    %35 = arith.addf %33, %34 : vector<8x32xf32>
    %cst_12 = arith.constant 0.000000e+00 : f32
    %36 = vector.broadcast %cst_12 : f32 to vector<8x32xf32>
    %37 = arith.maximumf %35, %36 : vector<8x32xf32>
    %c0_13 = arith.constant 0 : index
    %c0_14 = arith.constant 0 : index
    %38 = vector.load %arg4[%c0_13, %c0_14] : memref<32x32xf32, #tpu.memory_space<vmem>>, vector<32x32xf32>
    %cst_15 = arith.constant dense<0.000000e+00> : vector<8x32xf32>
    %39 = tpu.matmul %37, %38, %cst_15 {dimension_numbers = #tpu.dot_dimension_numbers<[1], [0], [0], [1], [0, 0, 1, 1], [], []>} : vector<8x32xf32>, vector<32x32xf32>, vector<8x32xf32> -> vector<8x32xf32>
    %40 = vector.broadcast %6 : vector<1x32xf32> to vector<8x32xf32>
    %41 = arith.addf %39, %40 : vector<8x32xf32>
    %cst_16 = arith.constant dense<0.000000e+00> : vector<8xf32>
    %42 = vector.multi_reduction <add>, %41, %cst_16 [1] : vector<8x32xf32> to vector<8xf32>
    %43 = vector.shape_cast %42 : vector<8xf32> to vector<8x1xf32>
    %cst_17 = arith.constant 3.200000e+01 : f32
    %44 = vector.broadcast %cst_17 : f32 to vector<8x1xf32>
    %45 = arith.divf %43, %44 : vector<8x1xf32>
    %46 = vector.broadcast %45 : vector<8x1xf32> to vector<8x32xf32>
    %47 = arith.subf %41, %46 : vector<8x32xf32>
    %48 = arith.mulf %47, %47 : vector<8x32xf32>
    %cst_18 = arith.constant dense<0.000000e+00> : vector<8xf32>
    %49 = vector.multi_reduction <add>, %48, %cst_18 [1] : vector<8x32xf32> to vector<8xf32>
    %50 = vector.shape_cast %49 : vector<8xf32> to vector<8x1xf32>
    %cst_19 = arith.constant 3.200000e+01 : f32
    %51 = vector.broadcast %cst_19 : f32 to vector<8x1xf32>
    %52 = arith.divf %50, %51 : vector<8x1xf32>
    %cst_20 = arith.constant 9.99999974E-6 : f32
    %53 = vector.broadcast %cst_20 : f32 to vector<8x1xf32>
    %54 = arith.addf %52, %53 : vector<8x1xf32>
    %55 = math.rsqrt %54 : vector<8x1xf32>
    %56 = vector.broadcast %55 : vector<8x1xf32> to vector<8x32xf32>
    %57 = arith.mulf %47, %56 : vector<8x32xf32>
    %58 = vector.broadcast %7 : vector<1x32xf32> to vector<8x32xf32>
    %59 = arith.mulf %57, %58 : vector<8x32xf32>
    %60 = vector.broadcast %8 : vector<1x32xf32> to vector<8x32xf32>
    %61 = arith.addf %59, %60 : vector<8x32xf32>
    %cst_21 = arith.constant 0.000000e+00 : f32
    %62 = vector.broadcast %cst_21 : f32 to vector<8x32xf32>
    %63 = arith.maximumf %61, %62 : vector<8x32xf32>
    %c0_22 = arith.constant 0 : index
    %c0_23 = arith.constant 0 : index
    %64 = vector.load %arg5[%c0_22, %c0_23] : memref<8x32xf32, #tpu.memory_space<vmem>>, vector<8x32xf32>
    %cst_24 = arith.constant dense<0.000000e+00> : vector<8x32xf32>
    %65 = tpu.matmul %1, %64, %cst_24 {dimension_numbers = #tpu.dot_dimension_numbers<[1], [0], [0], [1], [0, 0, 1, 1], [], []>} : vector<8x8xf32>, vector<8x32xf32>, vector<8x32xf32> -> vector<8x32xf32>
    %66 = vector.broadcast %9 : vector<1x32xf32> to vector<8x32xf32>
    %67 = arith.addf %65, %66 : vector<8x32xf32>
    %68 = arith.addf %63, %67 : vector<8x32xf32>
    %cst_25 = arith.constant 0.000000e+00 : f32
    %69 = vector.broadcast %cst_25 : f32 to vector<8x32xf32>
    %70 = arith.maximumf %68, %69 : vector<8x32xf32>
    %71 = vector.broadcast %10 : vector<1x32xf32> to vector<8x32xf32>
    %72 = arith.mulf %70, %71 : vector<8x32xf32>
    %cst_26 = arith.constant dense<0.000000e+00> : vector<8xf32>
    %73 = vector.multi_reduction <add>, %72, %cst_26 [1] : vector<8x32xf32> to vector<8xf32>
    %74 = vector.shape_cast %73 : vector<8xf32> to vector<8x1xf32>
    %75 = vector.broadcast %11 : vector<1x1xf32> to vector<8x1xf32>
    %76 = arith.addf %74, %75 : vector<8x1xf32>
    %77 = vector.shape_cast %76 : vector<8x1xf32> to vector<8x1xf32>
    %78 = vector.broadcast %77 : vector<8x1xf32> to vector<8x128xf32>
    %c0_27 = arith.constant 0 : index
    %c0_28 = arith.constant 0 : index
    %79 = vector.load %arg7[%c0_27, %c0_28] : memref<8x128xf32, #tpu.memory_space<vmem>>, vector<8x128xf32>
    tpu.vector_store %arg7[%c0_27, %c0_28], %78 {strides = array<i32>} : memref<8x128xf32, #tpu.memory_space<vmem>>, vector<8x128xf32>,
    return
  }
  func.func @transform_0(%arg0: i32) -> (i32, i32) {
    %c0_i32 = arith.constant 0 : i32
    %c0_i32_0 = arith.constant 0 : i32
    return %arg0, %c0_i32 : i32, i32
  }
  func.func @transform_1(%arg0: i32) -> (i32, i32) {
    %c0_i32 = arith.constant 0 : i32
    %c0_i32_0 = arith.constant 0 : i32
    return %arg0, %c0_i32 : i32, i32
  }
  func.func @transform_2(%arg0: i32) -> (i32, i32) {
    %c0_i32 = arith.constant 0 : i32
    %c0_i32_0 = arith.constant 0 : i32
    %c0_i32_1 = arith.constant 0 : i32
    return %c0_i32, %c0_i32_0 : i32, i32
  }
  func.func @transform_3(%arg0: i32) -> (i32, i32) {
    %c0_i32 = arith.constant 0 : i32
    %c0_i32_0 = arith.constant 0 : i32
    %c0_i32_1 = arith.constant 0 : i32
    return %c0_i32, %c0_i32_0 : i32, i32
  }
  func.func @transform_4(%arg0: i32) -> (i32, i32) {
    %c0_i32 = arith.constant 0 : i32
    %c0_i32_0 = arith.constant 0 : i32
    %c0_i32_1 = arith.constant 0 : i32
    return %c0_i32, %c0_i32_0 : i32, i32
  }
  func.func @transform_5(%arg0: i32) -> (i32, i32) {
    %c0_i32 = arith.constant 0 : i32
    %c0_i32_0 = arith.constant 0 : i32
    %c0_i32_1 = arith.constant 0 : i32
    return %c0_i32, %c0_i32_0 : i32, i32
  }
  func.func @transform_6(%arg0: i32) -> (i32, i32) {
    %c0_i32 = arith.constant 0 : i32
    %c0_i32_0 = arith.constant 0 : i32
    return %arg0, %c0_i32 : i32, i32
  }
}

</mosaic_0001>

<bundles_post_ra>
// kernel: tpu_custom_call.1
= control target key start
LH: loop header
LB: loop body
LE: loop exit
PB: predicated region body
PF: predicated region fallthrough
CT: control target
= control target key end

     0   :  { %11 = vsyncpa [#allocation3], 0  ;;  %s779_s0 = inlined_call_operand.hbm [shape: f32[8,16], index: 0, kind: input, shape index: {}]   ;;  %s780_s1 = inlined_call_operand.hbm [shape: f32[8,8], index: 1, kind: input, shape index: {}]   ;;  %s781_s2 = inlined_call_operand.hbm [shape: f32[16,32], index: 2, kind: input, shape index: {}]   ;;  %s782_s3 = inlined_call_operand.hbm [shape: f32[32,32], index: 3, kind: input, shape index: {}]   ;;  %s783_s4 = inlined_call_operand.hbm [shape: f32[8,32], index: 4, kind: input, shape index: {}]   ;;  %s784_s5 = inlined_call_operand.vmem [shape: f32[9,32], index: 5, kind: input, shape index: {}]   ;;  %s785_s6 = inlined_call_operand.hbm [shape: f32[8,128], index: 6, kind: output, shape index: {}]  }
   0x1   :  { %12 = vsyncpa [#allocation6], 0 }
   0x2   :  { %13 = vsyncpa [#allocation9], 0 }
   0x3   :  { %14 = vsyncpa [#allocation4], 0  ;;  %s622_s21 = smov [#allocation5]   ;;  %s482_s25 = scalar_lea.hbm %s780_s1, 128 }
   0x4   :  { %s31_s22 = sshll.u32 %s622_s21, 4  ;;  %p483_p0 = scmp.ne.s32.totalorder %s780_s1, %s482_s25  ;;  %s32_s22 = int_to_ptr.vmem [resolvable:$true] %s31_s22 }
   0x5   :  { %p486_p1 = scmp.lt.u32.totalorder %s482_s25, %s780_s1 }
   0x7   :  { %p488_p2 = pnand %p486_p1, %p483_p0 }
   0x9   :  { %491 = shalt.err (!%p488_p2)
}
   0xa   :  { %s492_s30 = scalar_lea.vmem %s32_s22, 128  ;;  %p497_p4 = scmp.lt.s32.totalorder %s32_s22, %s32_s22 }
   0xb   :  { %p493_p3 = scmp.ne.s32.totalorder %s32_s22, %s492_s30  ;;  %p498_p5 = scmp.lt.s32.totalorder %s492_s30, %s492_s30 }
   0xd   :  { %p499_p6 = por %p498_p5, %p497_p4 }
   0xf   :  { %p500_p7 = pnand %p499_p6, %p493_p3 }
  0x11   :  { %503 = shalt.err (!%p500_p7)
}
  0x12   :  { %34 = dma.hbm_to_vmem [thread:$0]  %s780_s1, 128, %s32_s22, [#allocation6]  }
  0x13   :  { %s623_s9 = smov [#allocation8]   ;;  %s624_s11 = smov [#allocation2]  }
  0x14   :  { %s52_s10 = sshll.u32 %s623_s9, 4  ;;  %s21_s12 = sshll.u32 %s624_s11, 4  ;;  %s53_s10 = int_to_ptr.vmem [resolvable:$true] %s52_s10  ;;  %s22_s12 = int_to_ptr.vmem [resolvable:$true] %s21_s12 }
  0x15   :  { %s504_s15 = scalar_lea.hbm %s782_s3, 512 }
  0x16   :  { %p505_p8 = scmp.ne.s32.totalorder %s782_s3, %s504_s15  ;;  %p508_p9 = scmp.lt.u32.totalorder %s504_s15, %s782_s3 }
  0x18   :  { %p510_p10 = pnand %p508_p9, %p505_p8 }
  0x1a   :  { %513 = shalt.err (!%p510_p10)
}
  0x1b   :  { %s514_s1 = scalar_lea.vmem %s53_s10, 512  ;;  %p519_p12 = scmp.lt.s32.totalorder %s53_s10, %s53_s10 }
  0x1c   :  { %p515_p11 = scmp.ne.s32.totalorder %s53_s10, %s514_s1  ;;  %p520_p13 = scmp.lt.s32.totalorder %s514_s1, %s514_s1 }
  0x1e   :  { %p521_p0 = por %p520_p13, %p519_p12 }
  0x20   :  { %p522_p1 = pnand %p521_p0, %p515_p11 }
  0x22   :  { %525 = shalt.err (!%p522_p1)
}
  0x23   :  { %s625_s20 = smov 128   ;;  %s626_s21 = smov 8  }
  0x24   :  { %58 = dma.hbm_to_vmem [thread:$0]  %s782_s3, 512, %s53_s10, [#allocation9], %s625_s20, %s625_s20, %s626_s21  }
  0x25   :  { %s526_s26 = scalar_lea.hbm %s779_s0, 128 }
  0x26   :  { %p527_p2 = scmp.ne.s32.totalorder %s779_s0, %s526_s26  ;;  %p530_p3 = scmp.lt.u32.totalorder %s526_s26, %s779_s0 }
  0x28   :  { %p532_p4 = pnand %p530_p3, %p527_p2 }
  0x2a   :  { %535 = shalt.err (!%p532_p4)
}
  0x2b   :  { %s536_s7 = scalar_lea.vmem %s22_s12, 128  ;;  %p541_p6 = scmp.lt.s32.totalorder %s22_s12, %s22_s12 }
  0x2c   :  { %p537_p5 = scmp.ne.s32.totalorder %s22_s12, %s536_s7  ;;  %p542_p7 = scmp.lt.s32.totalorder %s536_s7, %s536_s7 }
  0x2e   :  { %p543_p8 = por %p542_p7, %p541_p6 }
  0x30   :  { %p544_p9 = pnand %p543_p8, %p537_p5 }
  0x32   :  { %547 = shalt.err (!%p544_p9)
}
  0x33   :  { %24 = dma.hbm_to_vmem [thread:$0]  %s779_s0, 128, %s22_s12, [#allocation3]  }
  0x34   :  { %s627_s9 = smov [#allocation7]   ;;  %s628_s11 = smov [#allocation10]  }
  0x35   :  { %s40_s10 = sshll.u32 %s627_s9, 4  ;;  %s65_s13 = sshll.u32 %s628_s11, 4  ;;  %s41_s10 = int_to_ptr.vmem [resolvable:$true] %s40_s10  ;;  %s66_s13 = int_to_ptr.vmem [resolvable:$true] %s65_s13 }
  0x36   :  { %s548_s16 = scalar_lea.hbm %s781_s2, 256 }
  0x37   :  { %p549_p10 = scmp.ne.s32.totalorder %s781_s2, %s548_s16  ;;  %p552_p11 = scmp.lt.u32.totalorder %s548_s16, %s781_s2 }
  0x39   :  { %p554_p12 = pnand %p552_p11, %p549_p10 }
  0x3b   :  { %557 = shalt.err (!%p554_p12)
}
  0x3c   :  { %s558_s0 = scalar_lea.vmem %s41_s10, 256  ;;  %p563_p0 = scmp.lt.s32.totalorder %s41_s10, %s41_s10 }
  0x3d   :  { %p559_p13 = scmp.ne.s32.totalorder %s41_s10, %s558_s0  ;;  %p564_p1 = scmp.lt.s32.totalorder %s558_s0, %s558_s0 }
  0x3f   :  { %p565_p2 = por %p564_p1, %p563_p0 }
  0x41   :  { %p566_p3 = pnand %p565_p2, %p559_p13 }
  0x43   :  { %569 = shalt.err (!%p566_p3)
}
  0x44   :  { %46 = dma.hbm_to_vmem [thread:$0]  %s781_s2, 256, %s41_s10, [#allocation6], %s625_s20, %s625_s20, %s626_s21  }
  0x45   :  { %s570_s25 = scalar_lea.hbm %s783_s4, 128 }
  0x46   :  { %p571_p4 = scmp.ne.s32.totalorder %s783_s4, %s570_s25  ;;  %p574_p5 = scmp.lt.u32.totalorder %s570_s25, %s783_s4 }
  0x48   :  { %p576_p6 = pnand %p574_p5, %p571_p4 }
  0x4a   :  { %579 = shalt.err (!%p576_p6)
}
  0x4b   :  { %s580_s30 = scalar_lea.vmem %s66_s13, 128  ;;  %p585_p8 = scmp.lt.s32.totalorder %s66_s13, %s66_s13 }
  0x4c   :  { %p581_p7 = scmp.ne.s32.totalorder %s66_s13, %s580_s30  ;;  %p586_p9 = scmp.lt.s32.totalorder %s580_s30, %s580_s30 }
  0x4e   :  { %p587_p10 = por %p586_p9, %p585_p8 }
  0x50   :  { %p588_p11 = pnand %p587_p10, %p581_p7 }
  0x52   :  { %591 = shalt.err (!%p588_p11)
}
  0x53   :  { %68 = dma.hbm_to_vmem [thread:$0]  %s783_s4, 128, %s66_s13, [#allocation9]  }
  0x54   :  { %614 = dma.done.wait [#allocation3], 128  }
  0x55   :  { %615 = vsyncadd [#allocation3], 4294967168 }
  0x56   :  { %616 = dma.done.wait [#allocation6], 384  }
  0x57   :  { %617 = vsyncadd [#allocation6], 4294966912 }
  0x58   :  { %618 = dma.done.wait [#allocation9], 640  }
  0x59   :  { %619 = vsyncadd [#allocation9], 4294966656  ;;  %v629_v0 = vmov 0.0|0.0   ;;  %vm630_vm0 = vmmov 0   ;;  %v631_v1 = vmov 0.0   ;;  %v90_v2 = vld [vmem:[#allocation7] sm:$0xff]  ;;  %v92_v6 = vlaneseq }
  0x5a   :  { %455 = vmatprep.subr.bf16.mxu0 %v629_v0  ;;  %436 = vmatprep.mubr.msk.f32.mxu0 %vm630_vm0, %v631_v1  ;;  %v91_v3 = vld [vmem:[#allocation7 + $0x8] sm:$0xff]  ;;  %v86_v5 = vld [vmem:[#allocation2] sm:$0xff]  ;;  %vm96_vm1 = vcmask 130048   ;;  %v741_v9 = vld [vmem:[%s784_s5] sm:$0xff]  ;;  %vm170_vm2 = vcmask 261120   ;;  %vm306_vm3 = vcmask 64512  }
  0x5b   :  { %458 = vmatprep.subr.bf16.mxu1 %v629_v0  ;;  %447 = vmatprep.mubr.msk.f32.mxu1 %vm630_vm0, %v631_v1  ;;  %v456_v4 = vpack.c.bf16 %v91_v3, %v90_v2  ;;  %v735_v7 = vshrl.u32 %v92_v6, 7  ;;  %v196_v20 = vld [vmem:[#allocation8] sm:$0xff]  ;;  %v197_v21 = vld [vmem:[#allocation8 + $0x8] sm:$0xff]  ;;  %v198_v22 = vld [vmem:[#allocation8 + $0x10] sm:$0xff]  ;;  %s633_s8 = smov [#allocation11]  }
  0x5c   :  { %v459_v23 = vpack.c.bf16 %v197_v21, %v196_v20  ;;  %v199_v24 = vld [vmem:[#allocation8 + $0x18] sm:$0xff]  ;;  %v301_v38 = vld [vmem:[#allocation10] sm:$0xff]  ;;  %v87_v39 = vld [vmem:[#allocation5] sm:$0xff]  ;;  %s407_s9 = sshll.u32 %s633_s8, 4  ;;  %s408_s9 = int_to_ptr.vmem [resolvable:$true] %s407_s9 }
  0x5d   :  { %457 = vmatpush3.bf16.msra.mxu0 %v456_v4  ;;  %v94_v8 = vsub.s32 0, %v735_v7  ;;  %v462_v25 = vpack.c.bf16 %v199_v24, %v198_v22  ;;  %v187_v29 = vsub.s32 1, %v735_v7  ;;  %v192_v30 = vsub.s32 2, %v735_v7  ;;  %s592_s10 = scalar_lea.vmem %s408_s9, 128  ;;  %p597_p13 = scmp.lt.s32.totalorder %s408_s9, %s408_s9 }
  0x5e   :  { %450 = vmatprep.subr.mxu0 %v631_v1  ;;  %460 = vmatpush3.bf16.msra.mxu1 %v459_v23  ;;  %v202_v40 = vsub.s32 3, %v735_v7  ;;  %v292_v56 = vsub.s32 4, %v735_v7  ;;  %v297_v57 = vsub.s32 5, %v735_v7  ;;  %v304_v58 = vsub.s32 6, %v735_v7  ;;  %p593_p12 = scmp.ne.s32.totalorder %s408_s9, %s592_s10  ;;  %p598_p0 = scmp.lt.s32.totalorder %s592_s10, %s592_s10 }
  0x5f   :  { %v95_v10 = vrot.slane %v741_v9, %v94_v8  ;;  %461 = vmatprep.subr.bf16.mxu1 %v629_v0  ;;  %v188_v31 = vrot.slane %v741_v9, %v187_v29  ;;  %v193_v34 = vrot.slane %v741_v9, %v192_v30  ;;  %v384_v3 = vsub.s32 7, %v735_v7 }
  0x60   :  { %437 = vmatmul.mubr.msk.f32.vlgmr.msra.gmra.mrb[0].mxu0 %vm96_vm1, %v86_v5  ;;  %v203_v41 = vrot.slane %v741_v9, %v202_v40  ;;  %v293_v59 = vrot.slane %v741_v9, %v292_v56  ;;  %v298_v62 = vrot.slane %v741_v9, %v297_v57  ;;  %v305_v63 = vrot.slane %v741_v9, %v304_v58  ;;  %p599_p1 = por %p598_p0, %p597_p13 }
  0x61   :  { %452 = vmatprep.mubr.msk.f32.mxu0 %vm630_vm0, %v631_v1  ;;  %451 = vmatpush3.msra.mxu0 %v301_v38  ;;  %v385_v6 = vrot.slane %v741_v9, %v384_v3 }
  0x62   :  { %463 = vmatpush3.bf16.msra.mxu1 %v462_v25  ;;  %p600_p2 = pnand %p599_p1, %p593_p12 }
  0x64   :  { %453 = vmatmul.mubr.msk.f32.vlgmr.msra.gmra.mrb[2].mxu0 %vm306_vm3, %v87_v39 }
 0x133   :  { %v166_v11 = vpop.f32.mrb[0].mxu0 }
 0x134   :  { %v167_v12 = vadd.f32 %v166_v11, %v95_v10  ;;  %v438_v13 = vpop.f32.mrb[1].mxu0 }
 0x135   :  { %v421_v13 = vld [vmem:[%s784_s5 + $0x8] ss:$0 sm:$0xff] }
 0x136   :  { %v171_v14 = vsel %vm170_vm2, %v167_v12, 0.0 }
 0x137   :  { %172 = vadd.xlane.f32.xlu0 %v171_v14  ;;  %v376_v51 = vpop.f32.mrb[2].mxu0 }
 0x138   :  { %v454_v52 = vpop.f32.mrb[3].mxu0  ;;  %v377_v2 = vadd.f32 %v376_v51, %v305_v63 }
 0x1c4   :  { %v173_v15 = vpop.xlane.xlu0 %172 }
 0x1c5   :  { %v175_v16 = vmul.f32 0.03125, %v173_v15 }
 0x1c7   :  { %v176_v17 = vsub.f32 %v167_v12, %v175_v16  ;;  %v632_v12 = vmov 0  }
 0x1c8   :  { %476 = vset.pattern.permute.xlu1 %v632_v12  ;;  %477 = vset.pattern.permute.xlu0 %v632_v12 }
 0x1c9   :  { %v177_v18 = vmul.f32 %v176_v17, %v176_v17 }
 0x1cb   :  { %v178_v19 = vsel %vm170_vm2, %v177_v18, 0.0 }
 0x1cc   :  { %179 = vadd.xlane.f32.xlu0 %v178_v19 }
 0x259   :  { %v180_v26 = vpop.xlane.xlu0 %179 }
 0x25a   :  { %v181_v27 = vmul.f32 0.03125, %v180_v26 }
 0x25c   :  { %v182_v28 = vadd.f32 1e-05, %v181_v27 }
 0x25e   :  { %478 = vrsqrt.f32 %v182_v28 }
 0x268   :  { %v479_v32 = vpop.eup %478 }
 0x269   :  { %v184_v33 = vmul.f32 %v479_v32, %v176_v17 }
 0x26b   :  { %v189_v35 = vmul.f32 %v188_v31, %v184_v33 }
 0x26d   :  { %v194_v36 = vadd.f32 %v193_v34, %v189_v35 }
 0x26f   :  { %v195_v37 = vmax.f32 %v194_v36, 0.0 }
 0x271   :  { %448 = vmatmul.mubr.msk.f32.vlgmr.msra.gmra.mrb[0].mxu1 %vm170_vm2, %v195_v37 }
 0x344   :  { %v273_v42 = vpop.f32.mrb[0].mxu1 }
 0x345   :  { %v274_v43 = vadd.f32 %v273_v42, %v203_v41  ;;  %v449_v44 = vpop.f32.mrb[1].mxu1 }
 0x347   :  { %v277_v45 = vsel %vm170_vm2, %v274_v43, 0.0 }
 0x348   :  { %278 = vadd.xlane.f32.xlu1 %v277_v45 }
 0x3d5   :  { %v279_v46 = vpop.xlane.xlu1 %278 }
 0x3d6   :  { %v280_v47 = vmul.f32 0.03125, %v279_v46 }
 0x3d8   :  { %v281_v48 = vsub.f32 %v274_v43, %v280_v47 }
 0x3da   :  { %v282_v49 = vmul.f32 %v281_v48, %v281_v48 }
 0x3dc   :  { %v283_v50 = vsel %vm170_vm2, %v282_v49, 0.0 }
 0x3dd   :  { %284 = vadd.xlane.f32.xlu1 %v283_v50 }
 0x46a   :  { %v285_v53 = vpop.xlane.xlu1 %284 }
 0x46b   :  { %v286_v54 = vmul.f32 0.03125, %v285_v53 }
 0x46d   :  { %v287_v55 = vadd.f32 1e-05, %v286_v54 }
 0x46f   :  { %480 = vrsqrt.f32 %v287_v55 }
 0x479   :  { %v481_v60 = vpop.eup %480 }
 0x47a   :  { %v289_v61 = vmul.f32 %v481_v60, %v281_v48 }
 0x47c   :  { %v294_v0 = vmul.f32 %v293_v59, %v289_v61 }
 0x47e   :  { %v299_v1 = vadd.f32 %v298_v62, %v294_v0 }
 0x480   :  { %v300_v4 = vmax.f32 %v299_v1, 0.0 }
 0x482   :  { %v380_v5 = vadd.f32 %v377_v2, %v300_v4 }
 0x484   :  { %v381_v8 = vmax.f32 %v380_v5, 0.0 }
 0x486   :  { %v386_v10 = vmul.f32 %v385_v6, %v381_v8 }
 0x488   :  { %v387_v11 = vsel %vm170_vm2, %v386_v10, 0.0 }
 0x489   :  { %388 = vadd.xlane.f32.xlu0 %v387_v11 }
 0x516   :  { %v389_v14 = vpop.xlane.xlu0 %388 }
 0x517   :  { %v394_v15 = vadd.f32 %v421_v13, %v389_v14 }
 0x519   :  { %397 = vperm.xlu1 %476, %v394_v15  }
 0x598   :  { %v398_v7 = vpop.permute.xlu1 %397 }
 0x599   :  { %400 = vst [vmem:[#allocation11] sm:$0xff] %v398_v7 }
 0x59a   :  { %603 = shalt.err (!%p600_p2)
}
 0x59b   :  { %s604_s14 = scalar_lea.hbm %s785_s6, 128 }
 0x59c   :  { %p605_p3 = scmp.ne.s32.totalorder %s785_s6, %s604_s14  ;;  %p608_p4 = scmp.lt.u32.totalorder %s604_s14, %s785_s6 }
 0x59e   :  { %p610_p5 = pnand %p608_p4, %p605_p3 }
 0x5a0   :  { %613 = shalt.err (!%p610_p5)
}
 0x5a1   :  { %410 = dma.vmem_to_hbm [thread:$0]  %s408_s9, 128, %s785_s6, [#allocation4]  }
 0x5a2   :  { %620 = dma.done.wait [#allocation4], 128  }
 0x5a3   :  { %621 = vsyncadd [#allocation4], 4294967168 }
 0x5a4   :  { %414 = vsyncpa [#allocation3], 1 }
 0x5a5   :  { %415 = vsyncpa [#allocation6], 1 }
 0x5a6   :  { %416 = vsyncpa [#allocation9], 1 }
 0x5a7   :  { %417 = vsyncpa [#allocation4], 1 }

</bundles_post_ra>
